<compile_context>
chip_gen: v7x
topology: tpu7x:2x2x1
jax: 0.10.0
libtpu: 0.0.40
codegen_flags: <defaults>
</compile_context>

<pallas_src>
import numpy as np
import jax
import jax.numpy as jnp
from jax.experimental import pallas as pl
from jax.experimental.pallas import tpu as pltpu


def _pick_row_tile(N, row_tile):
    """Row tile: multiple of 128 (or the whole array when N is small), and at
    least 2 grid steps when N > 256 so v7x's two TensorCores both get work."""
    if N <= 256:
        return N
    half = max(128, ((N // 2) // 128) * 128)        # guarantees >= 2 tiles
    tn = min(int(row_tile), half)
    return max(128, (tn // 128) * 128)


def discriminator_forward(c, h_pl, weight, bias, negsamp_ratio, *, row_tile=1024):
    """Pallas implementation of Discriminator.forward(c, h_pl).

    weight: (n_h, n_h)  == torch bilinear weight[0]
    bias:   scalar      == torch bilinear bias[0]
    Returns logits of shape ((negsamp_ratio + 1) * N, 1), matching torch.cat.
    """
    N, n_h = c.shape
    assert h_pl.shape == (N, n_h)
    K = int(negsamp_ratio)
    K1 = K + 1
    if K > N - 1:
        # TODO(synk): negsamp_ratio >= N makes the torch row shuffle wrap onto
        # itself; the closed-form shift used here does not cover that corner.
        raise ValueError("negsamp_ratio must be <= N - 1")

    tn = _pick_row_tile(N, row_tile)
    G = -(-N // tn)                                  # number of row tiles
    PADR = max(8, ((K + 7) // 8) * 8)                # sublane-aligned halo rows
    if G > 1 and PADR > tn:
        raise ValueError("negsamp_ratio too large for the chosen row tile")

    # Per-tile "previous rows": prev[i, PADR-d] is the row sitting d rows
    # before the start of tile i in the shuffled ordering, d = 1..PADR.
    #   tile i >= 1 : c[i*tn - d]     (tail of the previous tile)
    #   tile 0      : c[N - 1 - d]    (torch wrap rows; only d <= K ever used)
    # This table is G*PADR rows (~N/tn * 8) -> a negligible wrapper gather.
    prev_idx = np.zeros((G, PADR), np.int32)
    for d in range(1, PADR + 1):
        prev_idx[0, PADR - d] = max(N - 1 - d, 0)
    for i in range(1, G):
        for d in range(1, PADR + 1):
            prev_idx[i, PADR - d] = i * tn - d
    prev_rows = jnp.take(c, jnp.asarray(prev_idx), axis=0)    # (G, PADR, n_h)

    bias_arr = jnp.asarray(bias, jnp.float32).reshape((1,))

    def kernel(hpl_ref, w_ref, c_ref, prev_ref, bias_ref, out_ref):
        # hpl_ref : (tn, n_h)       tile of h_pl rows
        # w_ref   : (n_h, n_h)      bilinear weight, resident across the grid
        # c_ref   : (tn, n_h)       tile of c rows (read from HBM exactly once)
        # prev_ref: (1, PADR, n_h)  rows just before this tile (wrap for tile 0)
        # bias_ref: (1,)            bilinear bias, SMEM
        # out_ref : (K1, tn)        scores, lane-dense along the node axis
        t = jnp.dot(hpl_ref[...], w_ref[...],
                    preferred_element_type=jnp.float32)              # MXU, f32
        c_ext = jnp.concatenate([prev_ref[0], c_ref[...]], axis=0)   # (PADR+tn, n_h)
        b = bias_ref[0]
        for k in range(K1):                       # unrolled; K1 is small/static
            c_shift = c_ext[PADR - k: PADR - k + tn, :]   # k-shifted c rows
            out_ref[k, :] = jnp.sum(t * c_shift, axis=-1) + b

    out = pl.pallas_call(
        kernel,
        grid=(G,),
        in_specs=[
            pl.BlockSpec((tn, n_h), lambda i: (i, 0)),            # h_pl tile
            pl.BlockSpec((n_h, n_h), lambda i: (0, 0)),           # W resident
            pl.BlockSpec((tn, n_h), lambda i: (i, 0)),            # c tile
            pl.BlockSpec((1, PADR, n_h), lambda i: (i, 0, 0)),    # prev rows
            pl.BlockSpec(memory_space=pltpu.MemorySpace.SMEM),    # bias scalar
        ],
        out_specs=pl.BlockSpec((K1, tn), lambda i: (0, i)),
        out_shape=jax.ShapeDtypeStruct((K1, N), jnp.float32),
        compiler_params=pltpu.CompilerParams(
            dimension_semantics=("parallel",)),
    )(h_pl, weight, c, prev_rows, bias_arr)

    # (K1, N) row-major reshape == torch.cat of the K1 (N, 1) score blocks.
    return out.reshape(K1 * N, 1)


def _reference(c, h_pl, weight, bias, negsamp_ratio):
    """Pure-JAX mirror of the PyTorch forward."""
    t = h_pl @ weight
    scs = []
    c_mi = c
    scs.append(jnp.sum(t * c_mi, axis=-1, keepdims=True) + bias)
    for _ in range(negsamp_ratio):
        c_mi = jnp.concatenate([c_mi[-2:-1, :], c_mi[:-1, :]], axis=0)
        scs.append(jnp.sum(t * c_mi, axis=-1, keepdims=True) + bias)
    return jnp.concatenate(scs, axis=0)


if __name__ == "__main__":
    key = jax.random.PRNGKey(0)

    # Case 1: module-consistent small shapes (single tile; wrap rows used).
    N, n_h, negsamp_ratio = 16, 32, 2
    k_c, k_h, k_w, key = jax.random.split(key, 4)
    c = jax.random.normal(k_c, (N, n_h), jnp.float32)
    h_pl = jax.random.normal(k_h, (N, n_h), jnp.float32)
    # torch.nn.Bilinear(n_h, n_h, 1): weight (1, n_h, n_h) -> take [0];
    # weights_init: xavier_uniform_ weight, bias filled with 0.0.
    limit = float(np.sqrt(6.0 / (n_h + n_h)))
    weight = jax.random.uniform(k_w, (n_h, n_h), jnp.float32, -limit, limit)
    bias = jnp.zeros((), jnp.float32)

    logits = discriminator_forward(c, h_pl, weight, bias, negsamp_ratio)
    jax.block_until_ready(logits)
    expected = _reference(c, h_pl, weight, bias, negsamp_ratio)
    assert logits.shape == ((negsamp_ratio + 1) * N, 1)
    assert bool(jnp.allclose(logits, expected, rtol=1e-5, atol=1e-5))

    # Case 2: multi-tile grid (tiles of 128, partial last tile) exercising the
    # cross-tile "previous rows" path as well as the tile-0 wrap rows.
    N2, nh2, ns2 = 400, 32, 3
    k_c2, k_h2, k_w2, key = jax.random.split(key, 4)
    c2 = jax.random.normal(k_c2, (N2, nh2), jnp.float32)
    h2 = jax.random.normal(k_h2, (N2, nh2), jnp.float32)
    lim2 = float(np.sqrt(6.0 / (nh2 + nh2)))
    w2 = jax.random.uniform(k_w2, (nh2, nh2), jnp.float32, -lim2, lim2)
    b2 = jnp.float32(0.1)

    logits2 = discriminator_forward(c2, h2, w2, b2, ns2, row_tile=128)
    jax.block_until_ready(logits2)
    expected2 = _reference(c2, h2, w2, b2, ns2)
    assert logits2.shape == ((ns2 + 1) * N2, 1)
    assert bool(jnp.allclose(logits2, expected2, rtol=1e-5, atol=1e-5))

    print("KERNEL_OK")
</pallas_src>

<mosaic_0001>
module attributes {stable_mosaic.version = 11 : i64} {
  func.func @kernel(%arg0: i32, %arg1: memref<16x32xf32, #tpu.memory_space<vmem>>, %arg2: memref<32x32xf32, #tpu.memory_space<vmem>>, %arg3: memref<16x32xf32, #tpu.memory_space<vmem>>, %arg4: memref<1x8x32xf32, #tpu.memory_space<vmem>>, %arg5: memref<1xf32, #tpu.memory_space<smem>>, %arg6: memref<3x16xf32, #tpu.memory_space<vmem>>) attributes {dimension_semantics = [#tpu.dimension_semantics<parallel>], iteration_bounds = array<i64: 1>, scalar_prefetch = 0 : i64, scratch_operands = 0 : i64, tpu.core_type = #tpu.core_type<tc>, window_params = [{transform_indices = @transform_0, window_bounds = array<i64: 16, 32>}, {pipeline_mode = #tpu.pipeline_mode<synchronous>, transform_indices = @transform_1, window_bounds = array<i64: 32, 32>}, {transform_indices = @transform_2, window_bounds = array<i64: 16, 32>}, {transform_indices = @transform_3, window_bounds = array<i64: 1, 8, 32>}, {transform_indices = @transform_4, window_bounds = array<i64: 1>}, {transform_indices = @transform_5, window_bounds = array<i64: 3, 16>}]} {
    %c0 = arith.constant 0 : index
    %c0_0 = arith.constant 0 : index
    %0 = vector.load %arg1[%c0, %c0_0] : memref<16x32xf32, #tpu.memory_space<vmem>>, vector<16x32xf32>
    %c0_1 = arith.constant 0 : index
    %c0_2 = arith.constant 0 : index
    %1 = vector.load %arg2[%c0_1, %c0_2] : memref<32x32xf32, #tpu.memory_space<vmem>>, vector<32x32xf32>
    %cst = arith.constant dense<0.000000e+00> : vector<16x32xf32>
    %2 = tpu.matmul %0, %1, %cst {dimension_numbers = #tpu.dot_dimension_numbers<[1], [0], [0], [1], [0, 0, 1, 1], [], []>} : vector<16x32xf32>, vector<32x32xf32>, vector<16x32xf32> -> vector<16x32xf32>
    %c0_3 = arith.constant 0 : index
    %c0_4 = arith.constant 0 : index
    %c0_5 = arith.constant 0 : index
    %3 = vector.load %arg4[%c0_3, %c0_4, %c0_5] : memref<1x8x32xf32, #tpu.memory_space<vmem>>, vector<1x8x32xf32>
    %4 = vector.shape_cast %3 : vector<1x8x32xf32> to vector<8x32xf32>
    %c0_6 = arith.constant 0 : index
    %c0_7 = arith.constant 0 : index
    %5 = vector.load %arg3[%c0_6, %c0_7] : memref<16x32xf32, #tpu.memory_space<vmem>>, vector<16x32xf32>
    %6 = tpu.concatenate %4, %5 in 0 : vector<8x32xf32>, vector<16x32xf32> -> vector<24x32xf32>
    %c0_8 = arith.constant 0 : index
    %7 = memref.load %arg5[%c0_8] : memref<1xf32, #tpu.memory_space<smem>>
    %8 = vector.extract_strided_slice %6 {offsets = [8, 0], sizes = [16, 32], strides = [1, 1]} : vector<24x32xf32> to vector<16x32xf32>
    %9 = arith.mulf %2, %8 : vector<16x32xf32>
    %cst_9 = arith.constant dense<0.000000e+00> : vector<16xf32>
    %10 = vector.multi_reduction <add>, %9, %cst_9 [1] : vector<16x32xf32> to vector<16xf32>
    %11 = vector.broadcast %7 : f32 to vector<16xf32>
    %12 = arith.addf %10, %11 : vector<16xf32>
    %c0_10 = arith.constant 0 : index
    %c0_11 = arith.constant 0 : index
    %13 = vector.load %arg6[%c0_10, %c0_11] : memref<3x16xf32, #tpu.memory_space<vmem>>, vector<1x16xf32>
    %14 = vector.shape_cast %13 : vector<1x16xf32> to vector<16xf32>
    %15 = vector.shape_cast %12 : vector<16xf32> to vector<1x16xf32>
    tpu.vector_store %arg6[%c0_10, %c0_11], %15 {strides = array<i32>} : memref<3x16xf32, #tpu.memory_space<vmem>>, vector<1x16xf32>,
    %16 = vector.extract_strided_slice %6 {offsets = [7, 0], sizes = [16, 32], strides = [1, 1]} : vector<24x32xf32> to vector<16x32xf32>
    %17 = arith.mulf %2, %16 : vector<16x32xf32>
    %cst_12 = arith.constant dense<0.000000e+00> : vector<16xf32>
    %18 = vector.multi_reduction <add>, %17, %cst_12 [1] : vector<16x32xf32> to vector<16xf32>
    %19 = vector.broadcast %7 : f32 to vector<16xf32>
    %20 = arith.addf %18, %19 : vector<16xf32>
    %c1 = arith.constant 1 : index
    %c0_13 = arith.constant 0 : index
    %21 = vector.load %arg6[%c1, %c0_13] : memref<3x16xf32, #tpu.memory_space<vmem>>, vector<1x16xf32>
    %22 = vector.shape_cast %21 : vector<1x16xf32> to vector<16xf32>
    %23 = vector.shape_cast %20 : vector<16xf32> to vector<1x16xf32>
    tpu.vector_store %arg6[%c1, %c0_13], %23 {strides = array<i32>} : memref<3x16xf32, #tpu.memory_space<vmem>>, vector<1x16xf32>,
    %24 = vector.extract_strided_slice %6 {offsets = [6, 0], sizes = [16, 32], strides = [1, 1]} : vector<24x32xf32> to vector<16x32xf32>
    %25 = arith.mulf %2, %24 : vector<16x32xf32>
    %cst_14 = arith.constant dense<0.000000e+00> : vector<16xf32>
    %26 = vector.multi_reduction <add>, %25, %cst_14 [1] : vector<16x32xf32> to vector<16xf32>
    %27 = vector.broadcast %7 : f32 to vector<16xf32>
    %28 = arith.addf %26, %27 : vector<16xf32>
    %c2 = arith.constant 2 : index
    %c0_15 = arith.constant 0 : index
    %29 = vector.load %arg6[%c2, %c0_15] : memref<3x16xf32, #tpu.memory_space<vmem>>, vector<1x16xf32>
    %30 = vector.shape_cast %29 : vector<1x16xf32> to vector<16xf32>
    %31 = vector.shape_cast %28 : vector<16xf32> to vector<1x16xf32>
    tpu.vector_store %arg6[%c2, %c0_15], %31 {strides = array<i32>} : memref<3x16xf32, #tpu.memory_space<vmem>>, vector<1x16xf32>,
    return
  }
  func.func @transform_0(%arg0: i32) -> (i32, i32) {
    %c0_i32 = arith.constant 0 : i32
    %c0_i32_0 = arith.constant 0 : i32
    return %arg0, %c0_i32 : i32, i32
  }
  func.func @transform_1(%arg0: i32) -> (i32, i32) {
    %c0_i32 = arith.constant 0 : i32
    %c0_i32_0 = arith.constant 0 : i32
    %c0_i32_1 = arith.constant 0 : i32
    return %c0_i32, %c0_i32_0 : i32, i32
  }
  func.func @transform_2(%arg0: i32) -> (i32, i32) {
    %c0_i32 = arith.constant 0 : i32
    %c0_i32_0 = arith.constant 0 : i32
    return %arg0, %c0_i32 : i32, i32
  }
  func.func @transform_3(%arg0: i32) -> (i32, i32, i32) {
    %c0_i32 = arith.constant 0 : i32
    %c0_i32_0 = arith.constant 0 : i32
    %c0_i32_1 = arith.constant 0 : i32
    return %arg0, %c0_i32, %c0_i32_0 : i32, i32, i32
  }
  func.func @transform_4(%arg0: i32) -> i32 {
    %c0_i32 = arith.constant 0 : i32
    %c0_i32_0 = arith.constant 0 : i32
    return %c0_i32 : i32
  }
  func.func @transform_5(%arg0: i32) -> (i32, i32) {
    %c0_i32 = arith.constant 0 : i32
    %c0_i32_0 = arith.constant 0 : i32
    return %c0_i32, %arg0 : i32, i32
  }
}

</mosaic_0001>

<bundles_post_ra>
// kernel: tpu_custom_call.1
= control target key start
LH: loop header
LB: loop body
LE: loop exit
PB: predicated region body
PF: predicated region fallthrough
CT: control target
= control target key end

     0   :  { %11 = vsyncpa [#allocation4], 0  ;;  %s512_s0 = inlined_call_operand.hbm [shape: f32[16,32], index: 0, kind: input, shape index: {}]   ;;  %s513_s1 = inlined_call_operand.hbm [shape: f32[32,32], index: 1, kind: input, shape index: {}]   ;;  %s514_s2 = inlined_call_operand.hbm [shape: f32[16,32], index: 2, kind: input, shape index: {}]   ;;  %s515_s3 = inlined_call_operand.vmem [shape: f32[1,8,32], index: 3, kind: input, shape index: {}]   ;;  %s516_s4 = inlined_call_operand.<no memory space> [shape: f32[1], index: 4, kind: input, shape index: {}]   ;;  %s517_s5 = inlined_call_operand.hbm [shape: f32[3,16], index: 5, kind: output, shape index: {}]  }
   0x1   :  { %12 = vsyncpa [#allocation7], 0 }
   0x2   :  { %13 = vsyncpa [#allocation5], 0  ;;  %s392_s18 = smov [#allocation6]   ;;  %s393_s20 = smov [#allocation3]  }
   0x3   :  { %s31_s19 = sshll.u32 %s392_s18, 4  ;;  %s19_s21 = sshll.u32 %s393_s20, 4  ;;  %s32_s19 = int_to_ptr.vmem [resolvable:$true] %s31_s19  ;;  %s428_s21 = int_to_ptr.vmem [resolvable:$true] %s19_s21 }
   0x4   :  { %s298_s24 = scalar_lea.hbm %s513_s1, 512 }
   0x5   :  { %p299_p0 = scmp.ne.s32.totalorder %s513_s1, %s298_s24  ;;  %p302_p1 = scmp.lt.u32.totalorder %s298_s24, %s513_s1 }
   0x7   :  { %p304_p2 = pnand %p302_p1, %p299_p0 }
   0x9   :  { %307 = shalt.err (!%p304_p2)
}
   0xa   :  { %s308_s29 = scalar_lea.vmem %s32_s19, 512  ;;  %p313_p4 = scmp.lt.s32.totalorder %s32_s19, %s32_s19 }
   0xb   :  { %p309_p3 = scmp.ne.s32.totalorder %s32_s19, %s308_s29  ;;  %p314_p5 = scmp.lt.s32.totalorder %s308_s29, %s308_s29 }
   0xd   :  { %p315_p6 = por %p314_p5, %p313_p4 }
   0xf   :  { %p316_p7 = pnand %p315_p6, %p309_p3 }
  0x11   :  { %319 = shalt.err (!%p316_p7)
}
  0x12   :  { %s394_s30 = smov 128   ;;  %s395_s6 = smov 8  }
  0x13   :  { %37 = dma.hbm_to_vmem [thread:$0]  %s513_s1, 512, %s32_s19, [#allocation7], %s394_s30, %s394_s30, %s395_s6  }
  0x14   :  { %s320_s11 = scalar_lea.hbm %s512_s0, 256 }
  0x15   :  { %p321_p8 = scmp.ne.s32.totalorder %s512_s0, %s320_s11  ;;  %p324_p9 = scmp.lt.u32.totalorder %s320_s11, %s512_s0 }
  0x17   :  { %p326_p10 = pnand %p324_p9, %p321_p8 }
  0x19   :  { %329 = shalt.err (!%p326_p10)
}
  0x1a   :  { %s330_s16 = scalar_lea.vmem %s428_s21, 256  ;;  %p335_p12 = scmp.lt.s32.totalorder %s428_s21, %s428_s21 }
  0x1b   :  { %p331_p11 = scmp.ne.s32.totalorder %s428_s21, %s330_s16  ;;  %p336_p13 = scmp.lt.s32.totalorder %s330_s16, %s330_s16 }
  0x1d   :  { %p337_p0 = por %p336_p13, %p335_p12 }
  0x1f   :  { %p338_p1 = pnand %p337_p0, %p331_p11 }
  0x21   :  { %341 = shalt.err (!%p338_p1)
}
  0x22   :  { %25 = dma.hbm_to_vmem [thread:$0]  %s512_s0, 256, %s428_s21, [#allocation4], %s394_s30, %s394_s30, %s395_s6  }
  0x23   :  { %s396_s18 = smov [#allocation8]   ;;  %s342_s23 = scalar_lea.hbm %s514_s2, 256 }
  0x24   :  { %s43_s19 = sshll.u32 %s396_s18, 4  ;;  %p343_p2 = scmp.ne.s32.totalorder %s514_s2, %s342_s23  ;;  %s44_s19 = int_to_ptr.vmem [resolvable:$true] %s43_s19 }
  0x25   :  { %p346_p3 = scmp.lt.u32.totalorder %s342_s23, %s514_s2 }
  0x27   :  { %p348_p4 = pnand %p346_p3, %p343_p2 }
  0x29   :  { %351 = shalt.err (!%p348_p4)
}
  0x2a   :  { %s352_s28 = scalar_lea.vmem %s44_s19, 256  ;;  %p357_p6 = scmp.lt.s32.totalorder %s44_s19, %s44_s19 }
  0x2b   :  { %p353_p5 = scmp.ne.s32.totalorder %s44_s19, %s352_s28  ;;  %p358_p7 = scmp.lt.s32.totalorder %s352_s28, %s352_s28 }
  0x2d   :  { %p359_p8 = por %p358_p7, %p357_p6 }
  0x2f   :  { %p360_p9 = pnand %p359_p8, %p353_p5 }
  0x31   :  { %363 = shalt.err (!%p360_p9)
}
  0x32   :  { %49 = dma.hbm_to_vmem [thread:$0]  %s514_s2, 256, %s44_s19, [#allocation7], %s394_s30, %s394_s30, %s395_s6  }
  0x33   :  { %386 = dma.done.wait [#allocation4], 256  }
  0x34   :  { %387 = vsyncadd [#allocation4], 4294967040 }
  0x35   :  { %388 = dma.done.wait [#allocation7], 768  }
  0x36   :  { %389 = vsyncadd [#allocation7], 4294966528  ;;  %vm69_vm0 = vcmask 261120   ;;  %v65_v0 = vld [vmem:[#allocation6] sm:$0xff]  ;;  %v66_v1 = vld [vmem:[#allocation6 + $0x8] sm:$0xff]  ;;  %vm187_vm1 = vcmask 1040384   ;;  %v168_v35 = vlaneseq  ;;  %v163_v39 = vstv %s516_s4 }
  0x37   :  { %v67_v2 = vld [vmem:[#allocation6 + $0x10] sm:$0xff]  ;;  %v284_v3 = vpack.c.bf16 %v66_v1, %v65_v0  ;;  %v68_v4 = vld [vmem:[#allocation6 + $0x18] sm:$0xff]  ;;  %v152_v8 = vld [vmem:[#allocation8] sm:$0xff]  ;;  %vm218_vm2 = vcmask 1041408   ;;  %vm179_vm3 = vcmask 130112   ;;  %vm182_vm4 = vcmask 122880  }
  0x38   :  { %v63_v5 = vld [vmem:[#allocation3] sm:$0xff]  ;;  %v288_v6 = vpack.c.bf16 %v68_v4, %v67_v2  ;;  %v64_v7 = vld [vmem:[#allocation3 + $0x8] sm:$0xff]  ;;  %v153_v9 = vld [vmem:[#allocation8 + $0x8] sm:$0xff]  ;;  %v189_v11 = vrot.slane %v152_v8, 7  ;;  %v220_v18 = vrot.slane %v152_v8, 6  ;;  %v169_v36 = vand.u32 127, %v168_v35 }
  0x39   :  { %281 = vmatprep.mubr.msk.f32.mxu0 %vm69_vm0, %v63_v5  ;;  %285 = vmatprep.subr.bf16.mxu0 %v284_v3  ;;  %v151_v10 = vld [vmem:[%s515_s3] sm:$0xff]  ;;  %v191_v12 = vrot.slane %v153_v9, 7  ;;  %v222_v19 = vrot.slane %v153_v9, 6  ;;  %v171_v37 = vshrl.u32 %v168_v35, 7  ;;  %s397_s4 = smov [#allocation9]  }
  0x3a   :  { %287 = vmatpush3.bf16.msra.mxu0 %v284_v3  ;;  %v188_v13 = vrot.slane %v151_v10, 7  ;;  %v219_v17 = vrot.slane %v151_v10, 6  ;;  %v174_v38 = vadd.s32 4294967288, %v169_v36  ;;  %s255_s6 = sshll.u32 %s397_s4, 4  ;;  %s256_s6 = int_to_ptr.vmem [resolvable:$true] %s255_s6 }
  0x3b   :  { %289 = vmatprep.subr.bf16.mxu0 %v288_v6  ;;  %v192_v14 = vsel %vm187_vm1, %v189_v11, %v191_v12  ;;  %v223_v28 = vsel %vm218_vm2, %v220_v18, %v222_v19  ;;  %v172_v45 = vsub.s32 %v169_v36, %v171_v37  ;;  %s364_s7 = scalar_lea.vmem %s256_s6, 64  ;;  %p369_p11 = scmp.lt.s32.totalorder %s256_s6, %s256_s6 }
  0x3c   :  { %v190_v16 = vsel %vm187_vm1, %v188_v13, %v189_v11  ;;  %v221_v27 = vsel %vm218_vm2, %v219_v17, %v220_v18  ;;  %v177_v42 = vsub.s32 %v174_v38, %v171_v37  ;;  %p365_p10 = scmp.ne.s32.totalorder %s256_s6, %s364_s7  ;;  %p370_p12 = scmp.lt.s32.totalorder %s364_s7, %s364_s7 }
  0x3e   :  { %291 = vmatpush3.bf16.msra.mxu0 %v288_v6  ;;  %p371_p13 = por %p370_p12, %p369_p11 }
  0x40   :  { %p372_p0 = pnand %p371_p13, %p365_p10 }
  0x41   :  { %282 = vmatmul.mubr.msk.f32.vlgmr.msra.gmra.mrb[0].mxu0 %vm69_vm0, %v64_v7 }
 0x114   :  { %v283_v15 = vpop.f32.mrb[0].mxu0 }
 0x115   :  { %v142_v20 = vpop.f32.mrb[1].mxu0  ;;  %v196_v21 = vmul.f32 %v283_v15, %v192_v14  ;;  %v156_v22 = vmul.f32 %v283_v15, %v153_v9  ;;  %v227_v32 = vmul.f32 %v283_v15, %v223_v28 }
 0x116   :  { %v155_v23 = vmul.f32 %v152_v8, %v142_v20  ;;  %v195_v24 = vmul.f32 %v190_v16, %v142_v20  ;;  %v226_v29 = vmul.f32 %v221_v27, %v142_v20 }
 0x117   :  { %v200_v25 = vsel %vm69_vm0, %v196_v21, 0.0  ;;  %v160_v26 = vsel %vm69_vm0, %v156_v22, 0.0  ;;  %v231_v33 = vsel %vm69_vm0, %v227_v32, 0.0 }
 0x118   :  { %201 = vadd.xlane.f32.xlu1 %v200_v25  ;;  %161 = vadd.xlane.f32.xlu0 %v160_v26  ;;  %v197_v30 = vsel %vm69_vm0, %v195_v24, 0.0  ;;  %v157_v31 = vsel %vm69_vm0, %v155_v23, 0.0  ;;  %v228_v34 = vsel %vm69_vm0, %v226_v29, 0.0 }
 0x11c   :  { %198 = vadd.xlane.f32.xlu1 %v197_v30  ;;  %158 = vadd.xlane.f32.xlu0 %v157_v31 }
 0x120   :  { %232 = vadd.xlane.f32.xlu1 %v231_v33  ;;  %229 = vadd.xlane.f32.xlu0 %v228_v34 }
 0x1a5   :  { %v202_v40 = vpop.xlane.xlu1 %201  ;;  %v162_v41 = vpop.xlane.xlu0 %161 }
 0x1a6   :  { %v204_v43 = vadd.f32 %v202_v40, %v163_v39  ;;  %v165_v44 = vadd.f32 %v163_v39, %v162_v41 }
 0x1a8   :  { %v214_v50 = vrot.slane %v204_v43, %v177_v42  ;;  %v178_v51 = vrot.slane %v165_v44, %v177_v42 }
 0x1a9   :  { %v199_v46 = vpop.xlane.xlu1 %198  ;;  %v159_v47 = vpop.xlane.xlu0 %158 }
 0x1aa   :  { %v203_v48 = vadd.f32 %v199_v46, %v163_v39  ;;  %v164_v49 = vadd.f32 %v163_v39, %v159_v47 }
 0x1ac   :  { %v210_v52 = vrot.slane %v203_v48, %v172_v45  ;;  %v173_v53 = vrot.slane %v164_v49, %v172_v45 }
 0x1ad   :  { %v233_v54 = vpop.xlane.xlu1 %232  ;;  %v230_v55 = vpop.xlane.xlu0 %229 }
 0x1ae   :  { %v215_v56 = vsel %vm179_vm3, %v214_v50, %v210_v52  ;;  %v180_v57 = vsel %vm179_vm3, %v178_v51, %v173_v53  ;;  %v235_v58 = vadd.f32 %v233_v54, %v163_v39  ;;  %v234_v59 = vadd.f32 %v230_v55, %v163_v39 }
 0x1af   :  { %183 = vst.msk [vmem:[#allocation9] sm:$0x1] %vm182_vm4, %v180_v57  ;;  %217 = vst.msk [vmem:[#allocation9 + $0x1] sm:$0x1] %vm182_vm4, %v215_v56 }
 0x1b0   :  { %v245_v60 = vrot.slane %v235_v58, %v177_v42  ;;  %v241_v61 = vrot.slane %v234_v59, %v172_v45 }
 0x1b2   :  { %v246_v62 = vsel %vm179_vm3, %v245_v60, %v241_v61 }
 0x1b3   :  { %248 = vst.msk [vmem:[#allocation9 + $0x2] sm:$0x1] %vm182_vm4, %v246_v62 }
 0x1b4   :  { %375 = shalt.err (!%p372_p0)
}
 0x1b5   :  { %s376_s10 = scalar_lea.hbm %s517_s5, 64 }
 0x1b6   :  { %p377_p1 = scmp.ne.s32.totalorder %s517_s5, %s376_s10  ;;  %p380_p2 = scmp.lt.u32.totalorder %s376_s10, %s517_s5 }
 0x1b8   :  { %p382_p3 = pnand %p380_p2, %p377_p1 }
 0x1ba   :  { %385 = shalt.err (!%p382_p3)
}
 0x1bb   :  { %258 = dma.vmem_to_hbm [thread:$0]  %s256_s6, 64, %s517_s5, [#allocation5]  }
 0x1bc   :  { %390 = dma.done.wait [#allocation5], 64  }
 0x1bd   :  { %391 = vsyncadd [#allocation5], 4294967232 }
 0x1be   :  { %262 = vsyncpa [#allocation4], 1 }
 0x1bf   :  { %263 = vsyncpa [#allocation7], 1 }
 0x1c0   :  { %264 = vsyncpa [#allocation5], 1 }

</bundles_post_ra>
